<compile_context>
chip_gen: v7x
topology: tpu7x:2x2x1
jax: 0.10.0
libtpu: 0.0.40
codegen_flags: <defaults>
</compile_context>

<pallas_src>
import functools

import jax
import jax.numpy as jnp
from jax.experimental import pallas as pl
from jax.experimental.pallas import tpu as pltpu

_MIB = 1024 * 1024
_MXU_M = 128  # smallest LHS-row tile allowed before switching to the chunked path


# ---------------------------------------------------------------------------
# Kernels
# ---------------------------------------------------------------------------
def _ffn_kernel_resident(x_ref, w1_ref, b1_ref, w2_ref, b2_ref, o_ref):
    # x: (TILE_N, dim) orig dtype; w1: (dim, hidden) bf16; b1: (1, hidden) f32
    # w2: (hidden, dim) bf16;      b2: (1, dim) f32;       o: (TILE_N, dim)
    x = x_ref[...].astype(w1_ref.dtype)  # cast to MXU dtype inside the kernel
    h = jnp.dot(x, w1_ref[...], preferred_element_type=jnp.float32) + b1_ref[...]
    # Exact (erf-based) GELU, matching torch.nn.GELU() default.
    h = 0.5 * h * (1.0 + jax.lax.erf(h * (2.0 ** -0.5)))
    y = jnp.dot(h.astype(w2_ref.dtype), w2_ref[...],
                preferred_element_type=jnp.float32) + b2_ref[...]
    o_ref[...] = y.astype(o_ref.dtype)


def _ffn_kernel_chunked(x_ref, w1_ref, b1_ref, w2_ref, b2_ref, o_ref, acc_ref):
    # Hidden dimension chunked: grid = (token_tiles, hidden_chunks), acc_ref is f32 VMEM.
    k = pl.program_id(1)

    @pl.when(k == 0)
    def _():
        acc_ref[...] = jnp.zeros_like(acc_ref)

    x = x_ref[...].astype(w1_ref.dtype)
    h = jnp.dot(x, w1_ref[...], preferred_element_type=jnp.float32) + b1_ref[...]
    h = 0.5 * h * (1.0 + jax.lax.erf(h * (2.0 ** -0.5)))
    acc_ref[...] += jnp.dot(h.astype(w2_ref.dtype), w2_ref[...],
                            preferred_element_type=jnp.float32)

    @pl.when(k == pl.num_programs(1) - 1)
    def _():
        o_ref[...] = (acc_ref[...] + b2_ref[...]).astype(o_ref.dtype)


# ---------------------------------------------------------------------------
# Planning helpers
# ---------------------------------------------------------------------------
def _round_up(x, m):
    return ((x + m - 1) // m) * m


@functools.lru_cache(maxsize=1)
def _vmem_capacity_bytes():
    try:
        return int(pltpu.get_tpu_info().vmem_capacity_bytes)
    except Exception:
        return 64 * _MIB  # conservative fallback (v7x per-TensorCore)


def _resident_spec(shape, n_grid_axes):
    """BlockSpec for an operand resident in VMEM for the whole grid (1 buffer, 1 DMA)."""
    zero = (0,) * len(shape)
    idx = (lambda i: zero) if n_grid_axes == 1 else (lambda i, k: zero)
    try:
        return pl.BlockSpec(shape, idx, pipeline_mode=pl.Buffered(1))
    except TypeError:  # older jax without pipeline_mode kwarg
        return pl.BlockSpec(shape, idx)


def _plan_resident(n, dim, hidden, xb, ob, wb, budget):
    """Largest token tile (>=128 rows) whose footprint fits; None if weights can't stay resident."""
    resident = 2 * dim * hidden * wb + (hidden + dim) * 4  # Buffered(1) weights + biases

    def footprint(t):
        return (resident
                + 2 * t * dim * xb          # double-buffered x tiles
                + 2 * t * dim * ob          # double-buffered out tiles
                + t * hidden * (4 + wb)     # f32 h + bf16 h intermediates
                + t * dim * 4)              # f32 y before the output cast

    n8 = max(8, _round_up(n, 8))
    for cand in (1024, 512, 256, _MXU_M):
        t = min(cand, n8)
        if footprint(t) <= budget:
            return t, footprint(t)
    return None, None


def _plan_chunked(n, dim, hidden, xb, ob, wb, budget, force_small_chunks=False):
    n8 = max(8, _round_up(n, 8))
    tile_n = min(512, n8)
    # Hidden chunk must be a multiple of 128 that divides hidden exactly, so no
    # out-of-bounds garbage ever enters the reduction over hidden.
    cands = [c for c in (2048, 1024, 512, 256, 128) if c <= hidden and hidden % c == 0]
    if not cands:
        cands = [hidden]
    if force_small_chunks:
        cands = cands[::-1]

    def footprint(tn, th):
        return (4 * dim * th * wb               # w1/w2 chunks, double-buffered
                + 2 * th * 4 + dim * 4          # b1 chunks (2 bufs) + resident b2
                + 2 * tn * dim * xb + 2 * tn * dim * ob
                + tn * dim * 4                  # f32 accumulator scratch
                + tn * th * (4 + wb))           # f32 h + bf16 h intermediates

    tile_h = cands[-1]
    for th in cands:
        if force_small_chunks or footprint(tile_n, th) <= budget:
            tile_h = th
            break
    while tile_n > 8 and footprint(tile_n, tile_h) > budget:
        tile_n = max(8, _round_up(tile_n // 2, 8))
    return tile_n, tile_h, footprint(tile_n, tile_h)


def _split_for_two_cores(n, tile_n):
    # The token axis is "parallel": v7x shards grid steps across its 2 TensorCores.
    # A 1-step grid would leave one TC idle; keep >= 2 steps when n allows it.
    if n > 8 and pl.cdiv(n, tile_n) == 1:
        tile_n = max(8, _round_up(-(-n // 2), 8))
    return tile_n


# ---------------------------------------------------------------------------
# Wrapper / glue
# ---------------------------------------------------------------------------
def prepare_ffn_params(w1, b1, w2, b2, compute_dtype=jnp.bfloat16):
    """One-time 'model load' conversion from PyTorch nn.Linear layout (out, in)."""
    hidden, dim = w1.shape
    w1_t = jnp.transpose(w1).astype(compute_dtype)   # (dim, hidden)
    w2_t = jnp.transpose(w2).astype(compute_dtype)   # (hidden, dim)
    b1_2d = b1.reshape(1, hidden).astype(jnp.float32)
    b2_2d = b2.reshape(1, dim).astype(jnp.float32)
    return w1_t, b1_2d, w2_t, b2_2d


@functools.partial(jax.jit, static_argnames=("force_chunked",))
def feed_forward(x, w1_t, b1_2d, w2_t, b2_2d, force_chunked=False):
    """x: (..., dim). Params come from prepare_ffn_params() (pre-transposed/cast)."""
    orig_shape = x.shape
    dim = orig_shape[-1]
    hidden = w1_t.shape[1]

    x2d = x.reshape(-1, dim)
    n = x2d.shape[0]

    xb = jnp.dtype(x.dtype).itemsize
    ob = jnp.dtype(x.dtype).itemsize
    wb = jnp.dtype(w1_t.dtype).itemsize

    capacity = _vmem_capacity_bytes()
    budget = (capacity * 3) // 4

    cost = pl.CostEstimate(
        flops=4 * n * dim * hidden,
        transcendentals=n * hidden,
        bytes_accessed=n * dim * (xb + ob) + 2 * dim * hidden * wb + (hidden + dim) * 4,
    )

    tile_n, footprint = (None, None)
    if not force_chunked:
        tile_n, footprint = _plan_resident(n, dim, hidden, xb, ob, wb, budget)

    if tile_n is not None:
        # --- Resident-weight path: weights DMA'd once, token tiles streamed. ---
        tile_n = _split_for_two_cores(n, tile_n)
        grid = (pl.cdiv(n, tile_n),)
        vmem_limit = int(min(capacity - 2 * _MIB, max(32 * _MIB, footprint + 8 * _MIB)))
        out2d = pl.pallas_call(
            _ffn_kernel_resident,
            out_shape=jax.ShapeDtypeStruct((n, dim), x.dtype),
            grid_spec=pltpu.PrefetchScalarGridSpec(
                num_scalar_prefetch=0,
                grid=grid,
                in_specs=[
                    pl.BlockSpec((tile_n, dim), lambda i: (i, 0)),   # x tile (streamed)
                    _resident_spec((dim, hidden), 1),                # w1 (resident, 1 buffer)
                    _resident_spec((1, hidden), 1),                  # b1
                    _resident_spec((hidden, dim), 1),                # w2
                    _resident_spec((1, dim), 1),                     # b2
                ],
                out_specs=pl.BlockSpec((tile_n, dim), lambda i: (i, 0)),
            ),
            compiler_params=pltpu.CompilerParams(
                dimension_semantics=("parallel",),
                vmem_limit_bytes=vmem_limit,
            ),
            cost_estimate=cost,
        )(x2d, w1_t, b1_2d, w2_t, b2_2d)
    else:
        # --- Hidden-chunked path: stream weight chunks, accumulate in f32 VMEM. ---
        tile_n, tile_h, footprint = _plan_chunked(
            n, dim, hidden, xb, ob, wb, budget, force_small_chunks=force_chunked)
        tile_n = _split_for_two_cores(n, tile_n)
        grid = (pl.cdiv(n, tile_n), hidden // tile_h)
        vmem_limit = int(min(capacity - 2 * _MIB, max(32 * _MIB, footprint + 8 * _MIB)))
        out2d = pl.pallas_call(
            _ffn_kernel_chunked,
            out_shape=jax.ShapeDtypeStruct((n, dim), x.dtype),
            grid_spec=pltpu.PrefetchScalarGridSpec(
                num_scalar_prefetch=0,
                grid=grid,
                in_specs=[
                    pl.BlockSpec((tile_n, dim), lambda i, k: (i, 0)),   # x tile (re-DMA only on i change)
                    pl.BlockSpec((dim, tile_h), lambda i, k: (0, k)),   # w1 chunk (streamed)
                    pl.BlockSpec((1, tile_h), lambda i, k: (0, k)),     # b1 chunk
                    pl.BlockSpec((tile_h, dim), lambda i, k: (k, 0)),   # w2 chunk
                    _resident_spec((1, dim), 2),                        # b2 (resident)
                ],
                out_specs=pl.BlockSpec((tile_n, dim), lambda i, k: (i, 0)),
                scratch_shapes=[pltpu.VMEM((tile_n, dim), jnp.float32)],
            ),
            compiler_params=pltpu.CompilerParams(
                dimension_semantics=("parallel", "arbitrary"),
                vmem_limit_bytes=vmem_limit,
            ),
            cost_estimate=cost,
        )(x2d, w1_t, b1_2d, w2_t, b2_2d)

    return out2d.reshape(orig_shape)


# ---------------------------------------------------------------------------
# Demo / correctness check
# ---------------------------------------------------------------------------
if __name__ == "__main__":
    key = jax.random.PRNGKey(0)

    def make_case(k, batch, seq, dim, hidden):
        k_x, k_w1, k_b1, k_w2, k_b2 = jax.random.split(k, 5)
        x = jax.random.normal(k_x, (batch, seq, dim), dtype=jnp.float32)
        # PyTorch nn.Linear parameter convention: (out_features, in_features).
        w1 = jax.random.normal(k_w1, (hidden, dim), dtype=jnp.float32) * 0.05
        b1 = jax.random.normal(k_b1, (hidden,), dtype=jnp.float32) * 0.05
        w2 = jax.random.normal(k_w2, (dim, hidden), dtype=jnp.float32) * 0.05
        b2 = jax.random.normal(k_b2, (dim,), dtype=jnp.float32) * 0.05
        return x, w1, b1, w2, b2

    def reference(x, w1, b1, w2, b2):
        h = x @ w1.T + b1
        h = 0.5 * h * (1.0 + jax.lax.erf(h / jnp.sqrt(2.0)))
        return h @ w2.T + b2

    k1, k2 = jax.random.split(key)

    # 1) Resident-weight path.
    x, w1, b1, w2, b2 = make_case(k1, batch=2, seq=8, dim=32, hidden=64)
    params = prepare_ffn_params(w1, b1, w2, b2)
    out = jax.block_until_ready(feed_forward(x, *params))
    ref = reference(x, w1, b1, w2, b2)
    assert out.shape == x.shape
    assert bool(jnp.all(jnp.isfinite(out)))
    assert jnp.allclose(out, ref, atol=2e-2, rtol=2e-2), float(jnp.max(jnp.abs(out - ref)))

    # 2) Hidden-chunked fallback path (forced here; used automatically when resident
    #    weights + a 128-row MXU tile exceed the per-generation VMEM budget).
    x, w1, b1, w2, b2 = make_case(k2, batch=2, seq=8, dim=128, hidden=256)
    params = prepare_ffn_params(w1, b1, w2, b2)
    out = jax.block_until_ready(feed_forward(x, *params, force_chunked=True))
    ref = reference(x, w1, b1, w2, b2)
    assert out.shape == x.shape
    assert bool(jnp.all(jnp.isfinite(out)))
    assert jnp.allclose(out, ref, atol=2e-2, rtol=2e-2), float(jnp.max(jnp.abs(out - ref)))

    print("KERNEL_OK")
</pallas_src>

<mosaic_0001>
module attributes {stable_mosaic.version = 11 : i64} {
  func.func @_ffn_kernel_resident(%arg0: i32, %arg1: memref<8x32xf32, #tpu.memory_space<vmem>>, %arg2: memref<32x64xbf16, #tpu.memory_space<vmem>>, %arg3: memref<1x64xf32, #tpu.memory_space<vmem>>, %arg4: memref<64x32xbf16, #tpu.memory_space<vmem>>, %arg5: memref<1x32xf32, #tpu.memory_space<vmem>>, %arg6: memref<8x32xf32, #tpu.memory_space<vmem>>) attributes {dimension_semantics = [#tpu.dimension_semantics<parallel>], iteration_bounds = array<i64: 2>, scalar_prefetch = 0 : i64, scratch_operands = 0 : i64, tpu.core_type = #tpu.core_type<tc>, window_params = [{transform_indices = @transform_0, window_bounds = array<i64: 8, 32>}, {pipeline_mode = #tpu.pipeline_mode<synchronous>, transform_indices = @transform_1, window_bounds = array<i64: 32, 64>}, {pipeline_mode = #tpu.pipeline_mode<synchronous>, transform_indices = @transform_2, window_bounds = array<i64: 1, 64>}, {pipeline_mode = #tpu.pipeline_mode<synchronous>, transform_indices = @transform_3, window_bounds = array<i64: 64, 32>}, {pipeline_mode = #tpu.pipeline_mode<synchronous>, transform_indices = @transform_4, window_bounds = array<i64: 1, 32>}, {transform_indices = @transform_5, window_bounds = array<i64: 8, 32>}]} {
    %c0 = arith.constant 0 : index
    %c0_0 = arith.constant 0 : index
    %0 = vector.load %arg1[%c0, %c0_0] : memref<8x32xf32, #tpu.memory_space<vmem>>, vector<8x32xf32>
    %1 = arith.truncf %0 : vector<8x32xf32> to vector<8x32xbf16>
    %c0_1 = arith.constant 0 : index
    %c0_2 = arith.constant 0 : index
    %2 = vector.load %arg2[%c0_1, %c0_2] : memref<32x64xbf16, #tpu.memory_space<vmem>>, vector<32x64xbf16>
    %cst = arith.constant dense<0.000000e+00> : vector<8x64xf32>
    %3 = tpu.matmul %1, %2, %cst {dimension_numbers = #tpu.dot_dimension_numbers<[1], [0], [0], [1], [0, 0, 1, 1], [], []>} : vector<8x32xbf16>, vector<32x64xbf16>, vector<8x64xf32> -> vector<8x64xf32>
    %c0_3 = arith.constant 0 : index
    %c0_4 = arith.constant 0 : index
    %4 = vector.load %arg3[%c0_3, %c0_4] : memref<1x64xf32, #tpu.memory_space<vmem>>, vector<1x64xf32>
    %5 = vector.broadcast %4 : vector<1x64xf32> to vector<8x64xf32>
    %6 = arith.addf %3, %5 : vector<8x64xf32>
    %cst_5 = arith.constant 5.000000e-01 : f32
    %7 = vector.broadcast %cst_5 : f32 to vector<8x64xf32>
    %8 = arith.mulf %7, %6 : vector<8x64xf32>
    %cst_6 = arith.constant 0.707106769 : f32
    %9 = vector.broadcast %cst_6 : f32 to vector<8x64xf32>
    %10 = arith.mulf %6, %9 : vector<8x64xf32>
    %11 = math.erf %10 : vector<8x64xf32>
    %cst_7 = arith.constant 1.000000e+00 : f32
    %12 = vector.broadcast %cst_7 : f32 to vector<8x64xf32>
    %13 = arith.addf %12, %11 : vector<8x64xf32>
    %14 = arith.mulf %8, %13 : vector<8x64xf32>
    %15 = arith.truncf %14 : vector<8x64xf32> to vector<8x64xbf16>
    %c0_8 = arith.constant 0 : index
    %c0_9 = arith.constant 0 : index
    %16 = vector.load %arg4[%c0_8, %c0_9] : memref<64x32xbf16, #tpu.memory_space<vmem>>, vector<64x32xbf16>
    %cst_10 = arith.constant dense<0.000000e+00> : vector<8x32xf32>
    %17 = tpu.matmul %15, %16, %cst_10 {dimension_numbers = #tpu.dot_dimension_numbers<[1], [0], [0], [1], [0, 0, 1, 1], [], []>} : vector<8x64xbf16>, vector<64x32xbf16>, vector<8x32xf32> -> vector<8x32xf32>
    %c0_11 = arith.constant 0 : index
    %c0_12 = arith.constant 0 : index
    %18 = vector.load %arg5[%c0_11, %c0_12] : memref<1x32xf32, #tpu.memory_space<vmem>>, vector<1x32xf32>
    %19 = vector.broadcast %18 : vector<1x32xf32> to vector<8x32xf32>
    %20 = arith.addf %17, %19 : vector<8x32xf32>
    %c0_13 = arith.constant 0 : index
    %c0_14 = arith.constant 0 : index
    %21 = vector.load %arg6[%c0_13, %c0_14] : memref<8x32xf32, #tpu.memory_space<vmem>>, vector<8x32xf32>
    tpu.vector_store %arg6[%c0_13, %c0_14], %20 {strides = array<i32>} : memref<8x32xf32, #tpu.memory_space<vmem>>, vector<8x32xf32>,
    return
  }
  func.func @transform_0(%arg0: i32) -> (i32, i32) {
    %c0_i32 = arith.constant 0 : i32
    %c0_i32_0 = arith.constant 0 : i32
    return %arg0, %c0_i32 : i32, i32
  }
  func.func @transform_1(%arg0: i32) -> (i32, i32) {
    %c0_i32 = arith.constant 0 : i32
    %c0_i32_0 = arith.constant 0 : i32
    %c0_i32_1 = arith.constant 0 : i32
    return %c0_i32, %c0_i32_0 : i32, i32
  }
  func.func @transform_2(%arg0: i32) -> (i32, i32) {
    %c0_i32 = arith.constant 0 : i32
    %c0_i32_0 = arith.constant 0 : i32
    %c0_i32_1 = arith.constant 0 : i32
    return %c0_i32, %c0_i32_0 : i32, i32
  }
  func.func @transform_3(%arg0: i32) -> (i32, i32) {
    %c0_i32 = arith.constant 0 : i32
    %c0_i32_0 = arith.constant 0 : i32
    %c0_i32_1 = arith.constant 0 : i32
    return %c0_i32, %c0_i32_0 : i32, i32
  }
  func.func @transform_4(%arg0: i32) -> (i32, i32) {
    %c0_i32 = arith.constant 0 : i32
    %c0_i32_0 = arith.constant 0 : i32
    %c0_i32_1 = arith.constant 0 : i32
    return %c0_i32, %c0_i32_0 : i32, i32
  }
  func.func @transform_5(%arg0: i32) -> (i32, i32) {
    %c0_i32 = arith.constant 0 : i32
    %c0_i32_0 = arith.constant 0 : i32
    return %arg0, %c0_i32 : i32, i32
  }
}

</mosaic_0001>

<bundles_post_ra>
// kernel: feed_forward.1
= control target key start
LH: loop header
LB: loop body
LE: loop exit
PB: predicated region body
PF: predicated region fallthrough
CT: control target
= control target key end

     0   :  { %10 = vsyncpa [#allocation3], 0  ;;  %s773_s0 = inlined_call_operand.vmem [shape: f32[16,32], index: 0, kind: input, shape index: {}]   ;;  %s774_s1 = inlined_call_operand.vmem [shape: bf16[32,64], index: 1, kind: input, shape index: {}]   ;;  %s775_s2 = inlined_call_operand.vmem [shape: f32[1,64], index: 2, kind: input, shape index: {}]   ;;  %s776_s3 = inlined_call_operand.vmem [shape: bf16[64,32], index: 3, kind: input, shape index: {}]   ;;  %s777_s4 = inlined_call_operand.vmem [shape: f32[1,32], index: 4, kind: input, shape index: {}]   ;;  %s778_s5 = inlined_call_operand.hbm [shape: f32[16,32], index: 5, kind: output, shape index: {}]  }
   0x1   :  { %12 = vsyncpa [#allocation3 + $0x1], 0  ;;  %s647_s18 = smov 0   ;;  %s649_s19 = smov 0  }
   0x2   :  { %s651_s20 = smov 0   ;;  %s653_s21 = smov 0  }
   0x3 LB: > { %s668_s22 = sadd.s32 4294967295, %s612_s21   ;;  %s453_s23 = sadd.s32 4294967294, %s612_s21   ;;  %s612_s21 = sphi %s653_s21, %s784_s21   ;;  %s608_s20 = sphi %s651_s20, %s783_s20   ;;  %s604_s19 = sphi %s649_s19, %s782_s19   ;;  %s600_s18 = sphi %s647_s18, %s781_s18  }
   0x4   : > { %s672_s24 = sadd.s32 1, %s612_s21   ;;  %s135_s25 = sadd.s32 1, %s608_s20 }
   0x5   : > { %s132_s26 = ssub.s32 %s612_s21, %s672_s24  ;;  %p145_p0 = scmp.ne.s32.totalorder %s608_s20, %s604_s19 }
   0x6   : > { %p133_p1 = scmp.eq.s32.totalorder %s132_s26, 0  ;;  %p146_p2 = scmp.eq.s32.totalorder %s668_s22, 1 }
   0x7   : > { %p151_p3 = scmp.ne.s32.totalorder %s604_s19, %s600_s18  ;;  %p152_p4 = scmp.eq.s32.totalorder %s453_s23, 1 }
   0x8   : > { %s683_s27 = scalar_select %p133_p1, %s608_s20, %s135_s25  }
   0x9   : > { %p685_p5 = por %p146_p2, %p145_p0  ;;  %p689_p6 = por %p152_p4, %p151_p3 }
   0xa   : > { %p456_p7 = scmp.ge.s32.totalorder %s612_s21, 1  ;;  %p189_p8 = scmp.lt.s32.totalorder %s612_s21, 3 }
   0xc   : > { %p190_p9 = pnand %p456_p7, %p189_p8 }
   0xd   : > { %v542_v0 = vld [vmem:[%s774_s1] sm:$0xff] (!%p190_p9)   ;;  %v614_v1 = vmov (!%p190_p9), 0.0   ;;  %v543_v2 = vld [vmem:[%s774_s1 + $0x8] sm:$0xff] (!%p190_p9)   ;;  %vm615_vm0 = vmmov (!%p190_p9), 0   ;;  %p216_p10 = scmp.lt.s32.totalorder (!%p190_p9), %s668_s22, 1  ;;  %vm246_vm1 = vcmask (!%p190_p9), 261120  }
   0xe   : > { %193 = sbr.rel (%p190_p9) target bundleno = 489 (0x1e9), region = 40  ;;  %481 = vmatprep.subr.bf16.mxu0 (!%p190_p9), %v614_v1  ;;  %489 = vmatprep.subr.bf16.mxu1 (!%p190_p9), %v614_v1  ;;  %v544_v5 = vld [vmem:[%s776_s3] sm:$0xff] (!%p190_p9)   ;;  %v545_v6 = vld [vmem:[%s776_s3 + $0x8] sm:$0xff] (!%p190_p9)   ;;  %v546_v7 = vld [vmem:[%s776_s3 + $0x10] sm:$0xff] (!%p190_p9)   ;;  %vm335_vm2 = vcmask (!%p190_p9), 523264   ;;  %s213_s8 = sand.u32 (!%p190_p9), 1, %s604_s19  }
   0xf   : > { %482 = vmatpush3.bf16.msra.mxu0 (!%p190_p9), %v542_v0  ;;  %485 = vmatprep.mubr.msk.bf16.mxu0 (!%p190_p9), %vm615_vm0, %v614_v1  ;;  %v547_v8 = vld [vmem:[%s776_s3 + $0x18] sm:$0xff] (!%p190_p9)   ;;  %v459_v9 = vld [vmem:[%s775_s2] ss:$0 sm:$0xff] (!%p190_p9)  ;;  %s470_s12 = sshll.u32 (!%p190_p9), %s668_s22, 7  ;;  %s616_s25 = smov (!%p190_p9), [#allocation2]  }
  0x10   : > { %483 = vmatprep.subr.bf16.mxu0 (!%p190_p9), %v614_v1  ;;  %497 = vmatprep.mubr.msk.bf16.mxu1 (!%p190_p9), %vm615_vm0, %v614_v1  ;;  %v463_v21 = vld [vmem:[%s777_s4] ss:$0 sm:$0xff] (!%p190_p9)  ;;  %s730_s17 = scalar_lea.hbm (!%p190_p9), %s778_s5, %s470_s12  ;;  %s554_s26 = sshll.u32 (!%p190_p9), %s616_s25, 4  ;;  %s555_s26 = int_to_ptr.vmem [resolvable:$false] %s554_s26 }
  0x11   : > { %490 = vmatpush3.bf16.msra.mxu1 (!%p190_p9), %v544_v5  ;;  %s556_s30 = scalar_lea.vmem (!%p190_p9), %s555_s26, 256 }
  0x12   : > { %491 = vmatprep.subr.bf16.mxu1 (!%p190_p9), %v614_v1 }
  0x13   : > { %484 = vmatpush3.bf16.msra.mxu0 (!%p190_p9), %v543_v2 }
  0x15   : > { %s217_s9 = scalar_select %p216_p10, %s668_s22, 1  ;;  %492 = vmatpush3.bf16.msra.mxu1 %v545_v6 }
  0x16   : > { %493 = vmatprep.subr.bf16.mxu1 %v614_v1  ;;  %s381_s22 = scalar_lea.sflag [#allocation3], %s213_s8 }
  0x17   : > { %s458_s10 = sshll.u32 %s217_s9, 3  ;;  %s457_s9 = sshll.u32 %s213_s8, 3 }
  0x18   : > { %s219_s13 = scalar_lea.vmem %s773_s0, %s458_s10 }
  0x19   : > { %v221_v3 = vld [vmem:[%s219_s13] sm:$0xff]  ;;  %494 = vmatpush3.bf16.msra.mxu1 %v546_v7  ;;  %s215_s13 = scalar_lea.vmem [#allocation2], %s457_s9 }
  0x1a   : > { %v222_v4 = vpack.c.bf16 %v221_v3, %v221_v3  ;;  %495 = vmatprep.subr.bf16.mxu1 %v614_v1  ;;  %s394_s14 = sshll.u32 %s215_s13, 4  ;;  %s732_s14 = int_to_ptr.vmem [resolvable:$true] %s394_s14 }
  0x1b   : > { %s550_s23 = scalar_lea.vmem %s732_s14, 128  ;;  %p557_p0 = scmp.lt.s32.totalorder %s732_s14, %s555_s26 }
  0x1c   : > { %486 = vmatmul.mubr.msk.bf16.vlgmr.msra.gmra.mrb[0].mxu0 %vm246_vm1, %v222_v4  ;;  %p551_p11 = scmp.ne.s32.totalorder %s732_s14, %s550_s23  ;;  %p558_p1 = scmp.lt.s32.totalorder %s556_s30, %s550_s23 }
  0x1d   : > { %496 = vmatpush3.bf16.msra.mxu1 %v547_v8 }
  0x1e   : > { %p552_p12 = pnand %p551_p11, %p685_p5  ;;  %p559_p2 = por %p558_p1, %p557_p0 }
  0x20   : > { %p553_p13 = pneg %p552_p12 }
  0x22   : > { %p560_p3 = pnand %p559_p2, %p553_p13 }
  0xef   : > { %v284_v10 = vpop.f32.mrb[0].mxu0 }
  0xf0   : > { %v285_v11 = vadd.f32 %v459_v9, %v284_v10  ;;  %v487_v12 = vpop.f32.mrb[1].mxu0 }
  0xf1   : > { %v287_v13 = vpop.f32.mrb[2].mxu0 }
  0xf2   : > { %v291_v14 = vmul.f32 0.70710677, %v285_v11  ;;  %v488_v15 = vpop.f32.mrb[3].mxu0  ;;  %v290_v17 = vmul.f32 0.5, %v285_v11 }
  0xf4   : > { %548 = verf.f32 %v291_v14 }
  0xfe   : > { %v549_v16 = vpop.eup %548 }
  0xff   : > { %v293_v18 = vadd.f32 1.0, %v549_v16 }
 0x101   : > { %v294_v19 = vmul.f32 %v293_v18, %v290_v17 }
 0x103   : > { %v295_v20 = vpack.c.bf16 %v294_v19, %v294_v19 }
 0x105   : > { %498 = vmatmul.mubr.msk.bf16.vlgmr.msra.gmra.mrb[0].mxu1 %vm335_vm2, %v295_v20 }
 0x1d8   : > { %v373_v22 = vpop.f32.mrb[0].mxu1 }
 0x1d9   : > { %v374_v23 = vadd.f32 %v463_v21, %v373_v22  ;;  %v499_v24 = vpop.f32.mrb[1].mxu1 }
 0x1da   : > { %v376_v25 = vpop.f32.mrb[2].mxu1 }
 0x1db   : > { %v500_v26 = vpop.f32.mrb[3].mxu1  ;;  %379 = vst.msk [vmem:[%s215_s13] sm:$0xff] %vm246_vm1, %v374_v23 }
 0x1dc   : > { %563 = shalt.err (!%p560_p3)
}
 0x1dd   : > { %s564_s6 = scalar_lea.hbm %s730_s17, 128  ;;  %s568_s9 = scalar_lea.hbm %s778_s5, 256 }
 0x1de   : > { %p565_p4 = scmp.ne.s32.totalorder %s730_s17, %s564_s6  ;;  %p569_p9 = scmp.lt.u32.totalorder %s730_s17, %s778_s5 }
 0x1df   : > { %p570_p10 = scmp.lt.u32.totalorder %s568_s9, %s564_s6  ;;  %p572_p12 = scmp.lt.u32.totalorder %s564_s6, %s730_s17 }
 0x1e0   : > { %p566_p7 = pnand %p565_p4, %p685_p5 }
 0x1e1   : > { %p571_p11 = por %p570_p10, %p569_p9 }
 0x1e2   : > { %p567_p8 = pneg %p566_p7 }
 0x1e3   : > { %p573_p13 = por %p572_p12, %p571_p11 }
 0x1e5   : > { %p574_p0 = pnand %p573_p13, %p567_p8 }
 0x1e7   : > { %577 = shalt.err (!%p574_p0)
}
 0x1e8   : > { %501 = dma.vmem_to_hbm [thread:$0]  (%p685_p5), %s732_s14, 128, %s730_s17, %s381_s22  }
 0x1e9 PF: > { %p507_p1 = scmp.ge.s32.totalorder %s612_s21, 2  ;;  %s406_s12 = sand.u32 1, %s600_s18  }
 0x1ea   : > { %s407_s13 = scalar_lea.sflag [#allocation3], %s406_s12 }
 0x1eb   : > { %p504_p2 = pnand %p507_p1, %p689_p6 }
 0x1ed   : > { %595 = dma.done.wait (!%p504_p2), %s407_s13, 128  }
 0x1ee   : > { %597 = vsyncadd (!%p504_p2), %s407_s13, 4294967168  ;;  %p15_p3 = scmp.ge.s32.totalorder %s672_s24, 4   ;;  %s781_s18 = smov %s604_s19 }
 0x1ef   : > { %s782_s19 = smov %s608_s20  ;;  %s783_s20 = smov %s683_s27 }
 0x1f0   : > { %s784_s21 = smov %s672_s24  ;;  %17 = sbr.rel (!%p15_p3) target bundleno = 3 (0x3), region = 75 }
 0x1f7   :  { %412 = vsyncpa [#allocation3], 1 }
 0x1f8   :  { %414 = vsyncpa [#allocation3 + $0x1], 1 }

</bundles_post_ra>
